<compile_context>
chip_gen: v7x
topology: tpu7x:2x2x1
jax: 0.10.0
libtpu: 0.0.40
codegen_flags: <defaults>
</compile_context>

<pallas_src>
import jax
import jax.numpy as jnp
from jax import lax
from jax.experimental import pallas as pl
from jax.experimental.pallas import tpu as pltpu


def _make_resident_kernel(TB, N, B_pad, D):
    """Both embedding tables VMEM-resident; gather rows with dynamic VMEM loads."""

    def kernel(cw_s, xw_s, cn_s, xn_s,      # SMEM scalar-prefetched int32 indices
               wtab_ref, ntab_ref,          # (V, D), (NGV, D) VMEM-resident tables
               out_ref,                     # (TB, 1) scores for this batch tile
               c_acc, x_acc):               # (TB, D) f32 accumulators
        base = pl.program_id(0) * TB

        def body(bi, carry):
            b = base + bi
            c = wtab_ref[pl.ds(cw_s[b], 1), :].astype(jnp.float32)
            x = wtab_ref[pl.ds(xw_s[b], 1), :].astype(jnp.float32)
            for n in range(N):               # static unroll over ngrams
                c = c + ntab_ref[pl.ds(cn_s[n * B_pad + b], 1), :].astype(jnp.float32)
                x = x + ntab_ref[pl.ds(xn_s[n * B_pad + b], 1), :].astype(jnp.float32)
            c_acc[pl.ds(bi, 1), :] = c
            x_acc[pl.ds(bi, 1), :] = x
            return carry

        lax.fori_loop(0, TB, body, 0)
        # Vectorized finalize: one multiply, one lane reduce, one store.
        out_ref[...] = jnp.sum(c_acc[...] * x_acc[...], axis=1, keepdims=True)

    return kernel


def _make_gather_kernel(TB, N, B_pad, D):
    """Tables stay in HBM; manual double-buffered, batched row-gather DMAs."""
    R = 2 + 2 * N                    # rows fetched per batch element
    R_pad = ((R + 7) // 8) * 8       # 8-sublane aligned slot stride in the ring

    def kernel(cw_s, xw_s, cn_s, xn_s,      # SMEM scalar-prefetched int32 indices
               wtab_hbm, ntab_hbm,          # HBM tables (memory_space=pl.ANY)
               out_ref,                     # (TB, 1)
               c_acc, x_acc,                # (TB, D) f32 accumulators
               rowbuf, sem):                # (2*R_pad, D) ring buffer, DMA sems (2,)
        base = pl.program_id(0) * TB

        def issue(bi, slot):
            b = base + bi
            off = slot * R_pad
            pltpu.make_async_copy(wtab_hbm.at[pl.ds(cw_s[b], 1), :],
                                  rowbuf.at[pl.ds(off + 0, 1), :],
                                  sem.at[slot]).start()
            pltpu.make_async_copy(wtab_hbm.at[pl.ds(xw_s[b], 1), :],
                                  rowbuf.at[pl.ds(off + 1, 1), :],
                                  sem.at[slot]).start()
            for n in range(N):
                pltpu.make_async_copy(ntab_hbm.at[pl.ds(cn_s[n * B_pad + b], 1), :],
                                      rowbuf.at[pl.ds(off + 2 + n, 1), :],
                                      sem.at[slot]).start()
                pltpu.make_async_copy(ntab_hbm.at[pl.ds(xn_s[n * B_pad + b], 1), :],
                                      rowbuf.at[pl.ds(off + 2 + N + n, 1), :],
                                      sem.at[slot]).start()

        def wait_rows(slot):
            off = slot * R_pad
            pltpu.make_async_copy(wtab_hbm.at[pl.ds(0, 1), :],
                                  rowbuf.at[pl.ds(off + 0, 1), :], sem.at[slot]).wait()
            pltpu.make_async_copy(wtab_hbm.at[pl.ds(0, 1), :],
                                  rowbuf.at[pl.ds(off + 1, 1), :], sem.at[slot]).wait()
            for r in range(2, R):
                pltpu.make_async_copy(ntab_hbm.at[pl.ds(0, 1), :],
                                      rowbuf.at[pl.ds(off + r, 1), :], sem.at[slot]).wait()

        issue(0, 0)                                  # prime slot 0

        def body(bi, carry):
            slot = bi % 2

            @pl.when(bi + 1 < TB)                    # prefetch next element's rows
            def _():
                issue(bi + 1, 1 - slot)

            wait_rows(slot)
            off = pl.multiple_of(slot * R_pad, 8)
            rows = rowbuf[pl.ds(off, R), :].astype(jnp.float32)   # (R, D)
            c = rows[0:1, :]
            x = rows[1:2, :]
            if N > 0:
                c = c + jnp.sum(rows[2:2 + N, :], axis=0, keepdims=True)
                x = x + jnp.sum(rows[2 + N:2 + 2 * N, :], axis=0, keepdims=True)
            c_acc[pl.ds(bi, 1), :] = c
            x_acc[pl.ds(bi, 1), :] = x
            return carry

        lax.fori_loop(0, TB, body, 0)
        out_ref[...] = jnp.sum(c_acc[...] * x_acc[...], axis=1, keepdims=True)

    return kernel


def _vmem_info():
    """(physical_vmem_bytes, resident-table budget) -- generation aware."""
    try:
        vmem_phys = int(pltpu.get_tpu_info().vmem_capacity_bytes)
    except Exception:
        vmem_phys = 64 * 1024 * 1024          # conservative (v7x-sized) default
    # Pipelined inputs may be double-buffered, so budget ~1/4 of physical VMEM.
    return vmem_phys, min(vmem_phys // 4, 48 * 1024 * 1024)


def fasttext_skipgram_score(center_word_idx, center_ngram_idxs,
                            context_word_idx, context_ngram_idxs,
                            word_embeddings, ngram_embeddings,
                            *, force_gather=False):
    assert word_embeddings.dtype == ngram_embeddings.dtype
    B = int(center_word_idx.shape[0])
    N = int(center_ngram_idxs.shape[0]) if center_ngram_idxs.ndim > 0 else 0
    V, D = (int(s) for s in word_embeddings.shape)
    NGV = int(ngram_embeddings.shape[0])

    # Batch tiling: one (TB, 1) output block per grid step, TB a multiple of 8.
    TB = 128 if B >= 128 else ((B + 7) // 8) * 8
    B_pad = ((B + TB - 1) // TB) * TB
    num_bt = B_pad // TB

    def pad_to(x, axis, total):
        pad = total - x.shape[axis]
        if pad == 0:
            return x
        widths = [(0, 0)] * x.ndim
        widths[axis] = (0, pad)
        return jnp.pad(x, widths)            # pads with index 0 (a valid row)

    # Clamp indices so a bad id can never turn into an out-of-bounds access/DMA.
    cw = pad_to(jnp.clip(center_word_idx.astype(jnp.int32), 0, V - 1), 0, B_pad)
    xw = pad_to(jnp.clip(context_word_idx.astype(jnp.int32), 0, V - 1), 0, B_pad)
    if N > 0:
        cn = pad_to(jnp.clip(center_ngram_idxs.astype(jnp.int32), 0, NGV - 1),
                    1, B_pad).reshape(-1)
        xn = pad_to(jnp.clip(context_ngram_idxs.astype(jnp.int32), 0, NGV - 1),
                    1, B_pad).reshape(-1)
    else:                                    # empty ngram set: dummies, never read
        cn = jnp.zeros((B_pad,), jnp.int32)
        xn = jnp.zeros((B_pad,), jnp.int32)

    itemsize = jnp.dtype(word_embeddings.dtype).itemsize
    table_bytes = (V + NGV) * D * itemsize
    vmem_phys, resident_budget = _vmem_info()
    use_resident = (table_bytes <= resident_budget) and not force_gather

    cost = pl.CostEstimate(
        flops=int((2 * N + 3) * B_pad * D),
        transcendentals=0,
        bytes_accessed=int((2 + 2 * N) * B_pad * D * itemsize   # gathered rows
                           + (2 + 2 * N) * B_pad * 4            # indices
                           + B_pad * 4))                        # scores

    out_shape = jax.ShapeDtypeStruct((B_pad, 1), jnp.float32)
    out_spec = pl.BlockSpec((TB, 1), lambda bt, cw_r, xw_r, cn_r, xn_r: (bt, 0))
    acc_scratch = [pltpu.VMEM((TB, D), jnp.float32),
                   pltpu.VMEM((TB, D), jnp.float32)]

    if use_resident:
        # Fast path: whole tables resident in VMEM (DMA'd once, constant block idx).
        grid_spec = pltpu.PrefetchScalarGridSpec(
            num_scalar_prefetch=4,
            grid=(num_bt,),
            in_specs=[
                pl.BlockSpec((V, D), lambda bt, cw_r, xw_r, cn_r, xn_r: (0, 0)),
                pl.BlockSpec((NGV, D), lambda bt, cw_r, xw_r, cn_r, xn_r: (0, 0)),
            ],
            out_specs=out_spec,
            scratch_shapes=acc_scratch)
        vmem_limit = int(min(vmem_phys * 3 // 4,
                             max(32 << 20,
                                 2 * table_bytes + 4 * TB * D * 4 + (8 << 20))))
        params = pltpu.CompilerParams(dimension_semantics=("parallel",),
                                      vmem_limit_bytes=vmem_limit)
        kernel = _make_resident_kernel(TB, N, B_pad, D)
    else:
        # Large-table path: tables stay in HBM, manual batched row-gather DMAs.
        R_pad = ((2 + 2 * N + 7) // 8) * 8
        grid_spec = pltpu.PrefetchScalarGridSpec(
            num_scalar_prefetch=4,
            grid=(num_bt,),
            in_specs=[pl.BlockSpec(memory_space=pl.ANY),
                      pl.BlockSpec(memory_space=pl.ANY)],
            out_specs=out_spec,
            scratch_shapes=acc_scratch + [
                pltpu.VMEM((2 * R_pad, D), word_embeddings.dtype),
                pltpu.SemaphoreType.DMA((2,)),
            ])
        params = pltpu.CompilerParams(dimension_semantics=("parallel",))
        kernel = _make_gather_kernel(TB, N, B_pad, D)

    out = pl.pallas_call(
        kernel,
        out_shape=out_shape,
        grid_spec=grid_spec,
        compiler_params=params,
        cost_estimate=cost,
    )(cw, xw, cn, xn, word_embeddings, ngram_embeddings)

    return out[:B, 0]


def _reference(cw, cn, xw, xn, word_emb, ngram_emb):
    center = word_emb[cw] + jnp.sum(ngram_emb[cn], axis=0)
    context = word_emb[xw] + jnp.sum(ngram_emb[xn], axis=0)
    return jnp.sum(center * context, axis=1)


if __name__ == "__main__":
    vocab_size = 64
    ngram_vocab_size = 256
    embedding_dim = 128
    B = 8   # batch
    N = 4   # ngrams per word

    key = jax.random.PRNGKey(0)
    k1, k2, k3, k4, k5, k6 = jax.random.split(key, 6)

    # Deterministic "parameter" init matching nn.Parameter(torch.randn(...) * 0.01)
    word_embeddings = jax.random.normal(k1, (vocab_size, embedding_dim), jnp.float32) * 0.01
    ngram_embeddings = jax.random.normal(k2, (ngram_vocab_size, embedding_dim), jnp.float32) * 0.01

    center_word_idx = jax.random.randint(k3, (B,), 0, vocab_size, dtype=jnp.int32)
    context_word_idx = jax.random.randint(k4, (B,), 0, vocab_size, dtype=jnp.int32)
    center_ngram_idxs = jax.random.randint(k5, (N, B), 0, ngram_vocab_size, dtype=jnp.int32)
    context_ngram_idxs = jax.random.randint(k6, (N, B), 0, ngram_vocab_size, dtype=jnp.int32)

    ref = _reference(center_word_idx, center_ngram_idxs,
                     context_word_idx, context_ngram_idxs,
                     word_embeddings, ngram_embeddings)

    # Resident (VMEM-table) fast path -- selected automatically for these sizes.
    score = fasttext_skipgram_score(center_word_idx, center_ngram_idxs,
                                    context_word_idx, context_ngram_idxs,
                                    word_embeddings, ngram_embeddings)
    score = jax.block_until_ready(score)
    assert score.shape == (B,)
    assert jnp.allclose(score, ref, atol=1e-5, rtol=1e-5), (score, ref)

    # Large-table path (manual HBM row-gather DMAs), forced here for coverage.
    score_g = fasttext_skipgram_score(center_word_idx, center_ngram_idxs,
                                      context_word_idx, context_ngram_idxs,
                                      word_embeddings, ngram_embeddings,
                                      force_gather=True)
    score_g = jax.block_until_ready(score_g)
    assert score_g.shape == (B,)
    assert jnp.allclose(score_g, ref, atol=1e-5, rtol=1e-5), (score_g, ref)

    print("KERNEL_OK")
</pallas_src>

<mosaic_0001>
module attributes {stable_mosaic.version = 11 : i64} {
  func.func @kernel(%arg0: i32, %arg1: memref<8xi32, #tpu.memory_space<smem>>, %arg2: memref<8xi32, #tpu.memory_space<smem>>, %arg3: memref<32xi32, #tpu.memory_space<smem>>, %arg4: memref<32xi32, #tpu.memory_space<smem>>, %arg5: memref<64x128xf32, #tpu.memory_space<vmem>>, %arg6: memref<256x128xf32, #tpu.memory_space<vmem>>, %arg7: memref<8x1xf32, #tpu.memory_space<vmem>>, %arg8: memref<8x128xf32, #tpu.memory_space<vmem>>, %arg9: memref<8x128xf32, #tpu.memory_space<vmem>>) attributes {dimension_semantics = [#tpu.dimension_semantics<parallel>], iteration_bounds = array<i64: 1>, scalar_prefetch = 4 : i64, scratch_operands = 2 : i64, tpu.core_type = #tpu.core_type<tc>, window_params = [{pipeline_mode = #tpu.pipeline_mode<synchronous>, transform_indices = @transform_0, window_bounds = array<i64: 64, 128>}, {pipeline_mode = #tpu.pipeline_mode<synchronous>, transform_indices = @transform_1, window_bounds = array<i64: 256, 128>}, {transform_indices = @transform_2, window_bounds = array<i64: 8, 1>}]} {
    %c8_i32 = arith.constant 8 : i32
    %0 = arith.muli %arg0, %c8_i32 : i32
    %c0_i32 = arith.constant 0 : i32
    %c8_i32_0 = arith.constant 8 : i32
    %1 = arith.addi %c0_i32, %c8_i32_0 : i32
    %c1_i32 = arith.constant 1 : i32
    scf.for %arg10 = %c0_i32 to %1 step %c1_i32  : i32 {
      %8 = arith.addi %0, %arg10 : i32
      %9 = arith.index_cast %8 : i32 to index
      %10 = memref.load %arg1[%9] : memref<8xi32, #tpu.memory_space<smem>>
      %11 = arith.index_cast %10 : i32 to index
      %c0_7 = arith.constant 0 : index
      %12 = vector.load %arg5[%11, %c0_7] : memref<64x128xf32, #tpu.memory_space<vmem>>, vector<1x128xf32>
      %13 = arith.index_cast %8 : i32 to index
      %14 = memref.load %arg2[%13] : memref<8xi32, #tpu.memory_space<smem>>
      %15 = arith.index_cast %14 : i32 to index
      %c0_8 = arith.constant 0 : index
      %16 = vector.load %arg5[%15, %c0_8] : memref<64x128xf32, #tpu.memory_space<vmem>>, vector<1x128xf32>
      %c0_i32_9 = arith.constant 0 : i32
      %17 = arith.addi %c0_i32_9, %8 : i32
      %18 = arith.index_cast %17 : i32 to index
      %19 = memref.load %arg3[%18] : memref<32xi32, #tpu.memory_space<smem>>
      %20 = arith.index_cast %19 : i32 to index
      %c0_10 = arith.constant 0 : index
      %21 = vector.load %arg6[%20, %c0_10] : memref<256x128xf32, #tpu.memory_space<vmem>>, vector<1x128xf32>
      %22 = arith.addf %12, %21 : vector<1x128xf32>
      %c0_i32_11 = arith.constant 0 : i32
      %23 = arith.addi %c0_i32_11, %8 : i32
      %24 = arith.index_cast %23 : i32 to index
      %25 = memref.load %arg4[%24] : memref<32xi32, #tpu.memory_space<smem>>
      %26 = arith.index_cast %25 : i32 to index
      %c0_12 = arith.constant 0 : index
      %27 = vector.load %arg6[%26, %c0_12] : memref<256x128xf32, #tpu.memory_space<vmem>>, vector<1x128xf32>
      %28 = arith.addf %16, %27 : vector<1x128xf32>
      %c8_i32_13 = arith.constant 8 : i32
      %29 = arith.addi %c8_i32_13, %8 : i32
      %30 = arith.index_cast %29 : i32 to index
      %31 = memref.load %arg3[%30] : memref<32xi32, #tpu.memory_space<smem>>
      %32 = arith.index_cast %31 : i32 to index
      %c0_14 = arith.constant 0 : index
      %33 = vector.load %arg6[%32, %c0_14] : memref<256x128xf32, #tpu.memory_space<vmem>>, vector<1x128xf32>
      %34 = arith.addf %22, %33 : vector<1x128xf32>
      %c8_i32_15 = arith.constant 8 : i32
      %35 = arith.addi %c8_i32_15, %8 : i32
      %36 = arith.index_cast %35 : i32 to index
      %37 = memref.load %arg4[%36] : memref<32xi32, #tpu.memory_space<smem>>
      %38 = arith.index_cast %37 : i32 to index
      %c0_16 = arith.constant 0 : index
      %39 = vector.load %arg6[%38, %c0_16] : memref<256x128xf32, #tpu.memory_space<vmem>>, vector<1x128xf32>
      %40 = arith.addf %28, %39 : vector<1x128xf32>
      %c16_i32 = arith.constant 16 : i32
      %41 = arith.addi %c16_i32, %8 : i32
      %42 = arith.index_cast %41 : i32 to index
      %43 = memref.load %arg3[%42] : memref<32xi32, #tpu.memory_space<smem>>
      %44 = arith.index_cast %43 : i32 to index
      %c0_17 = arith.constant 0 : index
      %45 = vector.load %arg6[%44, %c0_17] : memref<256x128xf32, #tpu.memory_space<vmem>>, vector<1x128xf32>
      %46 = arith.addf %34, %45 : vector<1x128xf32>
      %c16_i32_18 = arith.constant 16 : i32
      %47 = arith.addi %c16_i32_18, %8 : i32
      %48 = arith.index_cast %47 : i32 to index
      %49 = memref.load %arg4[%48] : memref<32xi32, #tpu.memory_space<smem>>
      %50 = arith.index_cast %49 : i32 to index
      %c0_19 = arith.constant 0 : index
      %51 = vector.load %arg6[%50, %c0_19] : memref<256x128xf32, #tpu.memory_space<vmem>>, vector<1x128xf32>
      %52 = arith.addf %40, %51 : vector<1x128xf32>
      %c24_i32 = arith.constant 24 : i32
      %53 = arith.addi %c24_i32, %8 : i32
      %54 = arith.index_cast %53 : i32 to index
      %55 = memref.load %arg3[%54] : memref<32xi32, #tpu.memory_space<smem>>
      %56 = arith.index_cast %55 : i32 to index
      %c0_20 = arith.constant 0 : index
      %57 = vector.load %arg6[%56, %c0_20] : memref<256x128xf32, #tpu.memory_space<vmem>>, vector<1x128xf32>
      %58 = arith.addf %46, %57 : vector<1x128xf32>
      %c24_i32_21 = arith.constant 24 : i32
      %59 = arith.addi %c24_i32_21, %8 : i32
      %60 = arith.index_cast %59 : i32 to index
      %61 = memref.load %arg4[%60] : memref<32xi32, #tpu.memory_space<smem>>
      %62 = arith.index_cast %61 : i32 to index
      %c0_22 = arith.constant 0 : index
      %63 = vector.load %arg6[%62, %c0_22] : memref<256x128xf32, #tpu.memory_space<vmem>>, vector<1x128xf32>
      %64 = arith.addf %52, %63 : vector<1x128xf32>
      %65 = arith.index_cast %arg10 : i32 to index
      %c0_23 = arith.constant 0 : index
      %66 = vector.load %arg8[%65, %c0_23] : memref<8x128xf32, #tpu.memory_space<vmem>>, vector<1x128xf32>
      tpu.vector_store %arg8[%65, %c0_23], %58 {strides = array<i32>} : memref<8x128xf32, #tpu.memory_space<vmem>>, vector<1x128xf32>,
      %67 = arith.index_cast %arg10 : i32 to index
      %c0_24 = arith.constant 0 : index
      %68 = vector.load %arg9[%67, %c0_24] : memref<8x128xf32, #tpu.memory_space<vmem>>, vector<1x128xf32>
      tpu.vector_store %arg9[%67, %c0_24], %64 {strides = array<i32>} : memref<8x128xf32, #tpu.memory_space<vmem>>, vector<1x128xf32>,
    }
    %c8_i32_1 = arith.constant 8 : i32
    %c0 = arith.constant 0 : index
    %c0_2 = arith.constant 0 : index
    %2 = vector.load %arg8[%c0, %c0_2] : memref<8x128xf32, #tpu.memory_space<vmem>>, vector<8x128xf32>
    %c0_3 = arith.constant 0 : index
    %c0_4 = arith.constant 0 : index
    %3 = vector.load %arg9[%c0_3, %c0_4] : memref<8x128xf32, #tpu.memory_space<vmem>>, vector<8x128xf32>
    %4 = arith.mulf %2, %3 : vector<8x128xf32>
    %cst = arith.constant dense<0.000000e+00> : vector<8xf32>
    %5 = vector.multi_reduction <add>, %4, %cst [1] : vector<8x128xf32> to vector<8xf32>
    %6 = vector.shape_cast %5 : vector<8xf32> to vector<8x1xf32>
    %c0_5 = arith.constant 0 : index
    %c0_6 = arith.constant 0 : index
    %7 = vector.load %arg7[%c0_5, %c0_6] : memref<8x1xf32, #tpu.memory_space<vmem>>, vector<8x1xf32>
    tpu.vector_store %arg7[%c0_5, %c0_6], %6 {strides = array<i32>} : memref<8x1xf32, #tpu.memory_space<vmem>>, vector<8x1xf32>,
    return
  }
  func.func @transform_0(%arg0: i32, %arg1: memref<8xi32, #tpu.memory_space<smem>>, %arg2: memref<8xi32, #tpu.memory_space<smem>>, %arg3: memref<32xi32, #tpu.memory_space<smem>>, %arg4: memref<32xi32, #tpu.memory_space<smem>>) -> (i32, i32) {
    %c0_i32 = arith.constant 0 : i32
    %c0_i32_0 = arith.constant 0 : i32
    %c0_i32_1 = arith.constant 0 : i32
    return %c0_i32, %c0_i32_0 : i32, i32
  }
  func.func @transform_1(%arg0: i32, %arg1: memref<8xi32, #tpu.memory_space<smem>>, %arg2: memref<8xi32, #tpu.memory_space<smem>>, %arg3: memref<32xi32, #tpu.memory_space<smem>>, %arg4: memref<32xi32, #tpu.memory_space<smem>>) -> (i32, i32) {
    %c0_i32 = arith.constant 0 : i32
    %c0_i32_0 = arith.constant 0 : i32
    %c0_i32_1 = arith.constant 0 : i32
    return %c0_i32, %c0_i32_0 : i32, i32
  }
  func.func @transform_2(%arg0: i32, %arg1: memref<8xi32, #tpu.memory_space<smem>>, %arg2: memref<8xi32, #tpu.memory_space<smem>>, %arg3: memref<32xi32, #tpu.memory_space<smem>>, %arg4: memref<32xi32, #tpu.memory_space<smem>>) -> (i32, i32) {
    %c0_i32 = arith.constant 0 : i32
    %c0_i32_0 = arith.constant 0 : i32
    return %arg0, %c0_i32 : i32, i32
  }
}

</mosaic_0001>

<bundles_post_ra>
// kernel: tpu_custom_call.1
= control target key start
LH: loop header
LB: loop body
LE: loop exit
PB: predicated region body
PF: predicated region fallthrough
CT: control target
= control target key end

     0   :  { %s370_s0 = inlined_call_operand.hbm [shape: s32[8], index: 0, kind: input, shape index: {}]   ;;  %s371_s4 = inlined_call_operand.hbm [shape: f32[64,128], index: 4, kind: input, shape index: {}]   ;;  %s372_s5 = inlined_call_operand.hbm [shape: f32[256,128], index: 5, kind: input, shape index: {}]   ;;  %s373_s6 = inlined_call_operand.vmem [shape: f32[8,1], index: 6, kind: output, shape index: {}]   ;;  %s374_s1 = inlined_call_operand.vmem [shape: s32[8], index: 1, kind: input, shape index: {}]   ;;  %s375_s2 = inlined_call_operand.vmem [shape: s32[32], index: 2, kind: input, shape index: {}]   ;;  %s376_s3 = inlined_call_operand.vmem [shape: s32[32], index: 3, kind: input, shape index: {}]  }
   0x1   :  { %s158_s23 = scalar_lea.hbm %s370_s0, 16 }
   0x2   :  { %p159_p0 = scmp.ne.s32.totalorder %s370_s0, %s158_s23  ;;  %p162_p1 = scmp.lt.u32.totalorder %s158_s23, %s370_s0 }
   0x4   :  { %p164_p2 = pnand %p162_p1, %p159_p0 }
   0x6   :  { %167 = shalt.err (!%p164_p2)  }
   0x7   :  { %s262_s28 = smov [#allocation5]   ;;  %s13_s9 = sshll.u32 %s374_s1, 4  ;;  %s14_s9 = int_to_ptr.vmem [resolvable:$true] %s13_s9 }
   0x8   :  { %12 = dma.hbm_to_smem %s370_s0, 16, %s262_s28, [#allocation4] }
   0x9   :  { %s17_s12 = sshll.u32 %s375_s2, 4  ;;  %s168_s13 = scalar_lea.vmem %s14_s9, 16  ;;  %s18_s12 = int_to_ptr.vmem [resolvable:$true] %s17_s12 }
   0xa   :  { %p169_p3 = scmp.ne.s32.totalorder %s14_s9, %s168_s13  ;;  %p173_p4 = scmp.lt.s32.totalorder %s14_s9, %s14_s9 }
   0xb   :  { %p174_p5 = scmp.lt.s32.totalorder %s168_s13, %s168_s13 }
   0xd   :  { %p175_p6 = por %p174_p5, %p173_p4 }
   0xf   :  { %p176_p7 = pnand %p175_p6, %p169_p3 }
  0x11   :  { %179 = shalt.err (!%p176_p7)  }
  0x12   :  { %s263_s14 = smov [#allocation6]   ;;  %s21_s16 = sshll.u32 %s376_s3, 4  ;;  %s22_s16 = int_to_ptr.vmem [resolvable:$true] %s21_s16 }
  0x13   :  { %16 = dma.vmem_to_smem %s14_s9, 16, %s263_s14, [#allocation4] }
  0x14   :  { %s180_s1 = scalar_lea.vmem %s18_s12, 16  ;;  %p185_p9 = scmp.lt.s32.totalorder %s18_s12, %s18_s12 }
  0x15   :  { %p181_p8 = scmp.ne.s32.totalorder %s18_s12, %s180_s1  ;;  %p186_p10 = scmp.lt.s32.totalorder %s180_s1, %s180_s1 }
  0x17   :  { %p187_p11 = por %p186_p10, %p185_p9 }
  0x19   :  { %p188_p12 = pnand %p187_p11, %p181_p8 }
  0x1b   :  { %191 = shalt.err (!%p188_p12)  }
  0x1c   :  { %s264_s2 = smov [#allocation7]   ;;  %s192_s17 = scalar_lea.vmem %s22_s16, 16 }
  0x1d   :  { %20 = dma.vmem_to_smem %s18_s12, 16, %s264_s2, [#allocation4] }
  0x1e   :  { %p193_p13 = scmp.ne.s32.totalorder %s22_s16, %s192_s17  ;;  %p197_p0 = scmp.lt.s32.totalorder %s22_s16, %s22_s16 }
  0x1f   :  { %p198_p1 = scmp.lt.s32.totalorder %s192_s17, %s192_s17 }
  0x21   :  { %p199_p2 = por %p198_p1, %p197_p0 }
  0x23   :  { %p200_p3 = pnand %p199_p2, %p193_p13 }
  0x25   :  { %203 = shalt.err (!%p200_p3)  }
  0x26   :  { %s265_s18 = smov [#allocation8]  }
  0x27   :  { %24 = dma.vmem_to_smem %s22_s16, 16, %s265_s18, [#allocation4] }
  0x28   :  { %252 = dma.done.wait [#allocation4], 64 }
  0x29   :  { %253 = vsyncadd [#allocation4], 4294967232 }
  0x2a   :  { %26 = sfence }
  0x2b   :  { %27 = vsyncpa [#allocation10], 0 }
  0x2c   :  { %28 = vsyncpa [#allocation12], 0  ;;  %s266_s3 = smov [#allocation9]   ;;  %s204_s22 = scalar_lea.hbm %s371_s4, 1024 }
  0x2d   :  { %s34_s19 = sshll.u32 %s266_s3, 4  ;;  %p205_p4 = scmp.ne.s32.totalorder %s371_s4, %s204_s22  ;;  %s35_s19 = int_to_ptr.vmem [resolvable:$true] %s34_s19 }
  0x2e   :  { %p208_p5 = scmp.lt.u32.totalorder %s204_s22, %s371_s4 }
  0x30   :  { %p210_p6 = pnand %p208_p5, %p205_p4 }
  0x32   :  { %213 = shalt.err (!%p210_p6)
}
  0x33   :  { %s214_s27 = scalar_lea.vmem %s35_s19, 1024  ;;  %p219_p8 = scmp.lt.s32.totalorder %s35_s19, %s35_s19 }
  0x34   :  { %p215_p7 = scmp.ne.s32.totalorder %s35_s19, %s214_s27  ;;  %p220_p9 = scmp.lt.s32.totalorder %s214_s27, %s214_s27 }
  0x36   :  { %p221_p10 = por %p220_p9, %p219_p8 }
  0x38   :  { %p222_p11 = pnand %p221_p10, %p215_p7 }
  0x3a   :  { %225 = shalt.err (!%p222_p11)
}
  0x3b   :  { %s267_s28 = smov 128   ;;  %s268_s29 = smov 8  }
  0x3c   :  { %40 = dma.hbm_to_vmem [thread:$0]  %s371_s4, 1024, %s35_s19, [#allocation10], %s267_s28, %s267_s28, %s268_s29  }
  0x3d   :  { %s269_s8 = smov [#allocation11]   ;;  %s226_s12 = scalar_lea.hbm %s372_s5, 4096 }
  0x3e   :  { %s46_s9 = sshll.u32 %s269_s8, 4  ;;  %p227_p12 = scmp.ne.s32.totalorder %s372_s5, %s226_s12  ;;  %s47_s9 = int_to_ptr.vmem [resolvable:$true] %s46_s9 }
  0x3f   :  { %p230_p13 = scmp.lt.u32.totalorder %s226_s12, %s372_s5 }
  0x41   :  { %p232_p0 = pnand %p230_p13, %p227_p12 }
  0x43   :  { %235 = shalt.err (!%p232_p0)
}
  0x44   :  { %s236_s16 = scalar_lea.vmem %s47_s9, 4096  ;;  %p241_p2 = scmp.lt.s32.totalorder %s47_s9, %s47_s9 }
  0x45   :  { %p237_p1 = scmp.ne.s32.totalorder %s47_s9, %s236_s16  ;;  %p242_p3 = scmp.lt.s32.totalorder %s236_s16, %s236_s16 }
  0x47   :  { %p243_p4 = por %p242_p3, %p241_p2 }
  0x49   :  { %p244_p5 = pnand %p243_p4, %p237_p1 }
  0x4b   :  { %247 = shalt.err (!%p244_p5)
}
  0x4c   :  { %52 = dma.hbm_to_vmem [thread:$0]  %s372_s5, 4096, %s47_s9, [#allocation12], %s267_s28, %s267_s28, %s268_s29  }
  0x4d   :  { %254 = dma.done.wait [#allocation10], 1024  }
  0x4e   :  { %255 = vsyncadd [#allocation10], 4294966272 }
  0x4f   :  { %256 = dma.done.wait [#allocation12], 4096  }
  0x50   :  { %257 = vsyncadd [#allocation12], 4294963200  ;;  %s350_s2 = smov 0  }
  0x51 LB: > { %s67_s17 = sld [smem:[#allocation5 + %s260_s2]]  ;;  %s81_s18 = sadd.s32 8, %s260_s2  ;;  %s260_s2 = sphi %s350_s2, %s65_s2  }
  0x52   : > { %s73_s5 = sld [smem:[#allocation7 + %s260_s2]]  ;;  %s90_s3 = sadd.s32 16, %s260_s2 }
  0x53   : > { %s82_s19 = sld [smem:[#allocation7 + %s81_s18]]  ;;  %s99_s21 = sadd.s32 24, %s260_s2 }
  0x54   : > { %s91_s20 = sld [smem:[#allocation7 + %s90_s3]]  ;;  %s108_s13 = scalar_lea.vmem [#allocation2], %s260_s2 }
  0x55   : > { %s100_s22 = sld [smem:[#allocation7 + %s99_s21]]  ;;  %s110_s0 = scalar_lea.vmem [#allocation3], %s260_s2 }
  0x56   : > { %s70_s23 = sld [smem:[#allocation6 + %s260_s2]] }
  0x57   : > { %s77_s24 = sld [smem:[#allocation8 + %s260_s2]]  ;;  %s68_s26 = scalar_lea.vmem [#allocation9], %s67_s17 }
  0x58   : > { %s86_s25 = sld [smem:[#allocation8 + %s81_s18]]  ;;  %v69_v0 = vld [vmem:[%s68_s26] sm:$0x1]  ;;  %s74_s27 = scalar_lea.vmem [#allocation11], %s73_s5 }
  0x59   : > { %v75_v1 = vld [vmem:[%s74_s27] sm:$0x1]  ;;  %s95_s28 = sld [smem:[#allocation8 + %s90_s3]]  ;;  %s83_s30 = scalar_lea.vmem [#allocation11], %s82_s19 }
  0x5a   : > { %s104_s29 = sld [smem:[#allocation8 + %s99_s21]]  ;;  %v76_v2 = vadd.f32 %v75_v1, %v69_v0  ;;  %v84_v3 = vld [vmem:[%s83_s30] sm:$0x1]  ;;  %s92_s7 = scalar_lea.vmem [#allocation11], %s91_s20 }
  0x5b   : > { %v93_v4 = vld [vmem:[%s92_s7] sm:$0x1]  ;;  %s101_s8 = scalar_lea.vmem [#allocation11], %s100_s22  ;;  %s65_s2 = sadd.s32 1, %s260_s2  }
  0x5c   : > { %v85_v5 = vadd.f32 %v84_v3, %v76_v2  ;;  %v102_v6 = vld [vmem:[%s101_s8] sm:$0x1]  ;;  %s71_s9 = scalar_lea.vmem [#allocation9], %s70_s23  ;;  %p62_p6 = scmp.ge.s32.totalorder %s65_s2, 8  }
  0x5d   : > { %v72_v7 = vld [vmem:[%s71_s9] sm:$0x1]  ;;  %s78_s10 = scalar_lea.vmem [#allocation11], %s77_s24  ;;  %vm117_vm0 = vcmask (%p62_p6), 7168  }
  0x5e   : > { %v94_v8 = vadd.f32 %v93_v4, %v85_v5  ;;  %v79_v9 = vld [vmem:[%s78_s10] sm:$0x1]  ;;  %s87_s11 = scalar_lea.vmem [#allocation11], %s86_s25 }
  0x5f   : > { %v88_v10 = vld [vmem:[%s87_s11] sm:$0x1]  ;;  %v80_v11 = vadd.f32 %v79_v9, %v72_v7  ;;  %s96_s12 = scalar_lea.vmem [#allocation11], %s95_s28 }
  0x60   : > { %v103_v12 = vadd.f32 %v102_v6, %v94_v8  ;;  %v97_v13 = vld [vmem:[%s96_s12] sm:$0x1]  ;;  %s105_s14 = scalar_lea.vmem [#allocation11], %s104_s29 }
  0x61   : > { %v89_v14 = vadd.f32 %v88_v10, %v80_v11  ;;  %v106_v15 = vld [vmem:[%s105_s14] sm:$0x1]  ;;  %64 = sbr.rel (!%p62_p6) target bundleno = 81 (0x51), region = 55 }
  0x62   : > { %109 = vst [vmem:[%s108_s13] sm:$0x1] %v103_v12 }
  0x63   : > { %v98_v16 = vadd.f32 %v97_v13, %v89_v14 }
  0x65   : > { %v107_v17 = vadd.f32 %v106_v15, %v98_v16 }
  0x67   : > { %111 = vst [vmem:[%s110_s0] sm:$0x1] %v107_v17 }
  0x69   :  { %v112_v18 = vld [vmem:[#allocation2] sm:$0xff] }
  0x6e   :  { %v113_v19 = vld [vmem:[#allocation3] sm:$0xff] }
  0x6f   :  { %v114_v20 = vmul.f32 %v113_v19, %v112_v18 }
  0x71   :  { %115 = vadd.xlane.f32.xlu0 %v114_v20 }
  0xfe   :  { %v116_v21 = vpop.xlane.xlu0 %115 }
  0xff   :  { %118 = vst.msk [vmem:[%s373_s6] sm:$0xff] %vm117_vm0, %v116_v21 }
 0x100   :  { %123 = vsyncpa [#allocation10], 1 }
 0x101   :  { %124 = vsyncpa [#allocation12], 1 }

</bundles_post_ra>
